<compile_context>
chip_gen: v7x
topology: tpu7x:2x2x1
jax: 0.10.0
libtpu: 0.0.40
codegen_flags: <defaults>
</compile_context>

<pallas_src>
import jax
import jax.numpy as jnp
from jax import lax
from jax.experimental import pallas as pl
from jax.experimental.pallas import tpu as pltpu

MIN_VALUE = -1.0            # module default min_value (clamp_min)
MAX_VALUE = 0.0             # module default max_value (clamp_max)
IN_FEATURES = 8
OUT_FEATURES = 4

REPLICAS = 32               # samples packed per reshaped row
K_BIG = IN_FEATURES * REPLICAS    # 256 (contraction dim)
N_BIG = OUT_FEATURES * REPLICAS   # 128 (lane-dense output)

ROW_ALIGN = 8               # sublane alignment for the row tile
DEFAULT_TILE_ROWS = 2048    # 2048 rows * 32 samples/row = 65536 samples / step
SMALL_BATCH = 8192          # below this, plain fused XLA beats any kernel


def _round_up(x, m):
    return ((x + m - 1) // m) * m


def _linear_clamp_kernel(x_ref, w_ref, b_ref, o_ref):
    # x_ref: (tile_rows, 256)  -- 32 samples packed per row
    # w_ref: (256, 128)        -- block-diagonal replicated W^T (grid-invariant)
    # b_ref: (1, 128)          -- bias tiled 32x (grid-invariant)
    # o_ref: (tile_rows, 128)  -- 32 outputs packed per row (lane-dense store)
    y = jnp.dot(x_ref[...], w_ref[...],
                preferred_element_type=jnp.float32,
                precision=lax.Precision.HIGHEST)
    y = y + b_ref[...]                    # broadcast along rows (VPU)
    y = jnp.maximum(y, MIN_VALUE)         # clamp_min
    y = jnp.minimum(y, MAX_VALUE)         # clamp_max
    o_ref[...] = y.astype(o_ref.dtype)


def linear_clamp(x, weight, bias, *, tile_rows=DEFAULT_TILE_ROWS,
                 force_pallas=False):
    """clamp(x @ W.T + b, -1.0, 0.0).  x: (8,) or (B, 8); weight: (4, 8); bias: (4,)."""
    squeeze = x.ndim == 1
    if squeeze:
        x = x[None, :]
    B = x.shape[0]

    # Small-batch fast path: kernel launch + padding would dominate.
    if not force_pallas and B < SMALL_BATCH:
        out = jnp.clip(
            jnp.matmul(x, weight.T, precision=lax.Precision.HIGHEST) + bias,
            MIN_VALUE, MAX_VALUE)
        return out[0] if squeeze else out

    # --- remainder-aware tiling of the reshaped (B/32, 256) matrix ---------
    b32 = pl.cdiv(B, REPLICAS)                       # rows needed (pre-pad)
    n_steps = max(1, pl.cdiv(b32, tile_rows))        # grid length
    tr = _round_up(pl.cdiv(b32, n_steps), ROW_ALIGN) # actual row tile
    bp32 = n_steps * tr                              # padded rows
    Bp = bp32 * REPLICAS                             # padded samples

    if Bp != B:
        x = jnp.pad(x, ((0, Bp - B), (0, 0)))
    xr = x.reshape(bp32, K_BIG)                      # free row-major reshape

    # Block-diagonal replicated weight (256, 128) and tiled bias (1, 128).
    w_big = jnp.kron(jnp.eye(REPLICAS, dtype=weight.dtype), weight.T)
    b_big = jnp.tile(bias, REPLICAS)[None, :]

    cost = pl.CostEstimate(
        flops=2 * bp32 * K_BIG * N_BIG,
        transcendentals=0,
        bytes_accessed=4 * (bp32 * K_BIG + bp32 * N_BIG + K_BIG * N_BIG + N_BIG),
    )

    out_r = pl.pallas_call(
        _linear_clamp_kernel,
        out_shape=jax.ShapeDtypeStruct((bp32, N_BIG), x.dtype),
        grid=(n_steps,),
        in_specs=[
            pl.BlockSpec((tr, K_BIG), lambda i: (i, 0)),       # x tile
            pl.BlockSpec((K_BIG, N_BIG), lambda i: (0, 0)),    # W_big, resident
            pl.BlockSpec((1, N_BIG), lambda i: (0, 0)),        # bias, resident
        ],
        out_specs=pl.BlockSpec((tr, N_BIG), lambda i: (i, 0)),
        compiler_params=pltpu.CompilerParams(
            dimension_semantics=("parallel",),                 # megacore / v7x split
        ),
        cost_estimate=cost,
    )(xr, w_big, b_big)

    out = out_r.reshape(Bp, OUT_FEATURES)[:B]                  # free reshape + slice
    return out[0] if squeeze else out


if __name__ == "__main__":
    key = jax.random.PRNGKey(0)
    kx, kw, kb, kb1, kb2 = jax.random.split(key, 5)

    # Deterministic params (Linear(8, 4): weight (4, 8), bias (4,))
    bound = 1.0 / (IN_FEATURES ** 0.5)
    weight = jax.random.uniform(kw, (OUT_FEATURES, IN_FEATURES),
                                jnp.float32, -bound, bound)
    bias = jax.random.uniform(kb, (OUT_FEATURES,), jnp.float32, -bound, bound)

    def ref_fn(xv):
        return jnp.clip(
            jnp.matmul(xv, weight.T, precision=lax.Precision.HIGHEST) + bias,
            MIN_VALUE, MAX_VALUE)

    # 1) Module's nominal input: x1 = randn(8)  (auto path -> fused XLA fast path)
    x1 = jax.random.normal(kx, (IN_FEATURES,), jnp.float32)
    out1 = linear_clamp(x1, weight, bias)
    jax.block_until_ready(out1)
    assert out1.shape == (OUT_FEATURES,)
    assert jnp.allclose(out1, ref_fn(x1), atol=1e-5, rtol=1e-5)

    # 2) Same vector forced through the Pallas kernel (B=1 pad path).
    out1p = linear_clamp(x1, weight, bias, force_pallas=True)
    jax.block_until_ready(out1p)
    assert jnp.allclose(out1p, ref_fn(x1), atol=1e-5, rtol=1e-5)

    # 3) Small batches through the Pallas kernel: ragged (padded) and 32-divisible.
    for B, kk in ((37, kb1), (1024, kb2)):
        xb = jax.random.normal(kk, (B, IN_FEATURES), jnp.float32)
        outb = linear_clamp(xb, weight, bias, force_pallas=True)
        jax.block_until_ready(outb)
        assert outb.shape == (B, OUT_FEATURES)
        assert jnp.allclose(outb, ref_fn(xb), atol=1e-5, rtol=1e-5)

    print("KERNEL_OK")
</pallas_src>

<mosaic_0001>
module attributes {stable_mosaic.version = 11 : i64} {
  func.func @_linear_clamp_kernel(%arg0: i32, %arg1: memref<8x256xf32, #tpu.memory_space<vmem>>, %arg2: memref<256x128xf32, #tpu.memory_space<vmem>>, %arg3: memref<1x128xf32, #tpu.memory_space<vmem>>, %arg4: memref<8x128xf32, #tpu.memory_space<vmem>>) attributes {dimension_semantics = [#tpu.dimension_semantics<parallel>], iteration_bounds = array<i64: 1>, scalar_prefetch = 0 : i64, scratch_operands = 0 : i64, tpu.core_type = #tpu.core_type<tc>, window_params = [{transform_indices = @transform_0, window_bounds = array<i64: 8, 256>}, {pipeline_mode = #tpu.pipeline_mode<synchronous>, transform_indices = @transform_1, window_bounds = array<i64: 256, 128>}, {pipeline_mode = #tpu.pipeline_mode<synchronous>, transform_indices = @transform_2, window_bounds = array<i64: 1, 128>}, {transform_indices = @transform_3, window_bounds = array<i64: 8, 128>}]} {
    %c0 = arith.constant 0 : index
    %c0_0 = arith.constant 0 : index
    %0 = vector.load %arg1[%c0, %c0_0] : memref<8x256xf32, #tpu.memory_space<vmem>>, vector<8x256xf32>
    %c0_1 = arith.constant 0 : index
    %c0_2 = arith.constant 0 : index
    %1 = vector.load %arg2[%c0_1, %c0_2] : memref<256x128xf32, #tpu.memory_space<vmem>>, vector<256x128xf32>
    %cst = arith.constant dense<0.000000e+00> : vector<8x128xf32>
    %2 = tpu.matmul %0, %1, %cst {dimension_numbers = #tpu.dot_dimension_numbers<[1], [0], [0], [1], [0, 0, 1, 1], [], []>, precision = #tpu.contract_precision<fp32>} : vector<8x256xf32>, vector<256x128xf32>, vector<8x128xf32> -> vector<8x128xf32>
    %c0_3 = arith.constant 0 : index
    %c0_4 = arith.constant 0 : index
    %3 = vector.load %arg3[%c0_3, %c0_4] : memref<1x128xf32, #tpu.memory_space<vmem>>, vector<1x128xf32>
    %4 = vector.broadcast %3 : vector<1x128xf32> to vector<8x128xf32>
    %5 = arith.addf %2, %4 : vector<8x128xf32>
    %cst_5 = arith.constant -1.000000e+00 : f32
    %6 = vector.broadcast %cst_5 : f32 to vector<8x128xf32>
    %7 = arith.maximumf %5, %6 : vector<8x128xf32>
    %cst_6 = arith.constant 0.000000e+00 : f32
    %8 = vector.broadcast %cst_6 : f32 to vector<8x128xf32>
    %9 = arith.minimumf %7, %8 : vector<8x128xf32>
    %c0_7 = arith.constant 0 : index
    %c0_8 = arith.constant 0 : index
    %10 = vector.load %arg4[%c0_7, %c0_8] : memref<8x128xf32, #tpu.memory_space<vmem>>, vector<8x128xf32>
    tpu.vector_store %arg4[%c0_7, %c0_8], %9 {strides = array<i32>} : memref<8x128xf32, #tpu.memory_space<vmem>>, vector<8x128xf32>,
    return
  }
  func.func @transform_0(%arg0: i32) -> (i32, i32) {
    %c0_i32 = arith.constant 0 : i32
    %c0_i32_0 = arith.constant 0 : i32
    return %arg0, %c0_i32 : i32, i32
  }
  func.func @transform_1(%arg0: i32) -> (i32, i32) {
    %c0_i32 = arith.constant 0 : i32
    %c0_i32_0 = arith.constant 0 : i32
    %c0_i32_1 = arith.constant 0 : i32
    return %c0_i32, %c0_i32_0 : i32, i32
  }
  func.func @transform_2(%arg0: i32) -> (i32, i32) {
    %c0_i32 = arith.constant 0 : i32
    %c0_i32_0 = arith.constant 0 : i32
    %c0_i32_1 = arith.constant 0 : i32
    return %c0_i32, %c0_i32_0 : i32, i32
  }
  func.func @transform_3(%arg0: i32) -> (i32, i32) {
    %c0_i32 = arith.constant 0 : i32
    %c0_i32_0 = arith.constant 0 : i32
    return %arg0, %c0_i32 : i32, i32
  }
}

</mosaic_0001>

<bundles_post_ra>
// kernel: tpu_custom_call.1
= control target key start
LH: loop header
LB: loop body
LE: loop exit
PB: predicated region body
PF: predicated region fallthrough
CT: control target
= control target key end

     0   :  { %8 = vsyncpa [#allocation3], 0  ;;  %s1912_s0 = inlined_call_operand.hbm [shape: f32[8,256], index: 0, kind: input, shape index: {}]   ;;  %s1913_s1 = inlined_call_operand.hbm [shape: f32[256,128], index: 1, kind: input, shape index: {}]   ;;  %s1914_s2 = inlined_call_operand.vmem [shape: f32[1,128], index: 2, kind: input, shape index: {}]   ;;  %s1915_s3 = inlined_call_operand.hbm [shape: f32[8,128], index: 3, kind: output, shape index: {}]  }
   0x1   :  { %9 = vsyncpa [#allocation6], 0 }
   0x2   :  { %10 = vsyncpa [#allocation4], 0  ;;  %s1443_s12 = smov [#allocation2]   ;;  %s1444_s14 = smov [#allocation5]  }
   0x3   :  { %s17_s13 = sshll.u32 %s1443_s12, 4  ;;  %s26_s15 = sshll.u32 %s1444_s14, 4  ;;  %s18_s13 = int_to_ptr.vmem [resolvable:$true] %s17_s13  ;;  %s1468_s15 = int_to_ptr.vmem [resolvable:$true] %s26_s15 }
   0x4   :  { %s1371_s18 = scalar_lea.hbm %s1912_s0, 256 }
   0x5   :  { %p1372_p0 = scmp.ne.s32.totalorder %s1912_s0, %s1371_s18  ;;  %p1375_p1 = scmp.lt.u32.totalorder %s1371_s18, %s1912_s0 }
   0x7   :  { %p1377_p2 = pnand %p1375_p1, %p1372_p0 }
   0x9   :  { %1380 = shalt.err (!%p1377_p2)
}
   0xa   :  { %s1381_s23 = scalar_lea.vmem %s18_s13, 256  ;;  %p1386_p4 = scmp.lt.s32.totalorder %s18_s13, %s18_s13 }
   0xb   :  { %p1382_p3 = scmp.ne.s32.totalorder %s18_s13, %s1381_s23  ;;  %p1387_p5 = scmp.lt.s32.totalorder %s1381_s23, %s1381_s23 }
   0xd   :  { %p1388_p6 = por %p1387_p5, %p1386_p4 }
   0xf   :  { %p1389_p7 = pnand %p1388_p6, %p1382_p3 }
  0x11   :  { %1392 = shalt.err (!%p1389_p7)
}
  0x12   :  { %20 = dma.hbm_to_vmem [thread:$0]  %s1912_s0, 256, %s18_s13, [#allocation3]  }
  0x13   :  { %s1393_s28 = scalar_lea.hbm %s1913_s1, 4096 }
  0x14   :  { %p1394_p8 = scmp.ne.s32.totalorder %s1913_s1, %s1393_s28  ;;  %p1397_p9 = scmp.lt.u32.totalorder %s1393_s28, %s1913_s1 }
  0x16   :  { %p1399_p10 = pnand %p1397_p9, %p1394_p8 }
  0x18   :  { %1402 = shalt.err (!%p1399_p10)
}
  0x19   :  { %s1403_s6 = scalar_lea.vmem %s1468_s15, 4096  ;;  %p1408_p12 = scmp.lt.s32.totalorder %s1468_s15, %s1468_s15 }
  0x1a   :  { %p1404_p11 = scmp.ne.s32.totalorder %s1468_s15, %s1403_s6  ;;  %p1409_p13 = scmp.lt.s32.totalorder %s1403_s6, %s1403_s6 }
  0x1c   :  { %p1410_p0 = por %p1409_p13, %p1408_p12 }
  0x1e   :  { %p1411_p1 = pnand %p1410_p0, %p1404_p11 }
  0x20   :  { %1414 = shalt.err (!%p1411_p1)
}
  0x21   :  { %s1445_s0 = smov 128   ;;  %s1446_s7 = smov 8  }
  0x22   :  { %32 = dma.hbm_to_vmem [thread:$0]  %s1913_s1, 4096, %s1468_s15, [#allocation6], %s1445_s0, %s1445_s0, %s1446_s7  }
  0x23   :  { %1437 = dma.done.wait [#allocation3], 256  }
  0x24   :  { %1438 = vsyncadd [#allocation3], 4294967040 }
  0x25   :  { %1439 = dma.done.wait [#allocation6], 4096  }
  0x26   :  { %1440 = vsyncadd [#allocation6], 4294963200  ;;  %v59_v0 = vld [vmem:[#allocation5 + $0x80] sm:$0xff]  ;;  %v60_v1 = vld [vmem:[#allocation5 + $0x88] sm:$0xff] }
  0x27   :  { %v43_v2 = vld [vmem:[#allocation5] sm:$0xff]  ;;  %v131_v3 = vand.u32 4294901760, %v59_v0  ;;  %v134_v4 = vand.u32 4294901760, %v60_v1  ;;  %v44_v5 = vld [vmem:[#allocation5 + $0x8] sm:$0xff]  ;;  %v61_v7 = vld [vmem:[#allocation5 + $0x90] sm:$0xff] }
  0x28   :  { %v83_v6 = vand.u32 4294901760, %v43_v2  ;;  %v62_v8 = vld [vmem:[#allocation5 + $0x98] sm:$0xff]  ;;  %v86_v9 = vand.u32 4294901760, %v44_v5  ;;  %v137_v10 = vand.u32 4294901760, %v61_v7  ;;  %v45_v12 = vld [vmem:[#allocation5 + $0x10] sm:$0xff]  ;;  %v63_v18 = vld [vmem:[#allocation5 + $0xa0] sm:$0xff] }
  0x29   :  { %v140_v11 = vand.u32 4294901760, %v62_v8  ;;  %v46_v13 = vld [vmem:[#allocation5 + $0x18] sm:$0xff]  ;;  %v1499_v14 = vpack.c.bf16 %v134_v4, %v131_v3  ;;  %v89_v16 = vand.u32 4294901760, %v45_v12  ;;  %v64_v19 = vld [vmem:[#allocation5 + $0xa8] sm:$0xff]  ;;  %v47_v23 = vld [vmem:[#allocation5 + $0x20] sm:$0xff]  ;;  %v143_v29 = vand.u32 4294901760, %v63_v18 }
  0x2a   :  { %v1501_v15 = vsub.f32 %v43_v2, %v83_v6  ;;  %v92_v17 = vand.u32 4294901760, %v46_v13  ;;  %v1503_v20 = vpack.c.bf16 %v86_v9, %v83_v6  ;;  %v1505_v21 = vsub.f32 %v44_v5, %v86_v9  ;;  %v48_v24 = vld [vmem:[#allocation5 + $0x28] sm:$0xff]  ;;  %v65_v37 = vld [vmem:[#allocation5 + $0xb0] sm:$0xff]  ;;  %v66_v42 = vld [vmem:[#allocation5 + $0xb8] sm:$0xff] }
  0x2b   :  { %v1507_v22 = vpack.c.bf16 %v140_v11, %v137_v10  ;;  %1175 = vmatprep.subr.bf16.mxu0 %v1499_v14  ;;  %v1510_v25 = vsub.f32 %v61_v7, %v137_v10  ;;  %v1512_v26 = vsub.f32 %v62_v8, %v140_v11  ;;  %v1516_v28 = vsub.f32 %v45_v12, %v89_v16  ;;  %v49_v55 = vld [vmem:[#allocation5 + $0x30] sm:$0xff]  ;;  %v50_v56 = vld [vmem:[#allocation5 + $0x38] sm:$0xff]  ;;  %v67_v5 = vld [vmem:[#allocation5 + $0xc0] sm:$0xff] }
  0x2c   :  { %v1514_v27 = vpack.c.bf16 %v92_v17, %v89_v16  ;;  %1177 = vmatpush3.bf16.msra.mxu0 %v1503_v20  ;;  %v146_v30 = vand.u32 4294901760, %v64_v19  ;;  %v1519_v31 = vsub.f32 %v59_v0, %v131_v3  ;;  %v1521_v32 = vsub.f32 %v60_v1, %v134_v4  ;;  %v68_v6 = vld [vmem:[#allocation5 + $0xc8] sm:$0xff]  ;;  %v51_v11 = vld [vmem:[#allocation5 + $0x40] sm:$0xff] }
  0x2d   :  { %1179 = vmatprep.subr.bf16.mxu0 %v1507_v22  ;;  %v95_v33 = vand.u32 4294901760, %v47_v23  ;;  %v98_v34 = vand.u32 4294901760, %v48_v24  ;;  %v1931_v35 = vand.u32 4294901760, %v1501_v15  ;;  %v1930_v36 = vand.u32 4294901760, %v1505_v21 }
  0x2e   :  { %v1526_v38 = vsub.f32 %v46_v13, %v92_v17  ;;  %v1528_v39 = vpack.c.bf16 %v146_v30, %v143_v29  ;;  %v1530_v40 = vsub.f32 %v63_v18, %v143_v29  ;;  %v1935_v41 = vand.u32 4294901760, %v1519_v31  ;;  %v52_v29 = vld [vmem:[#allocation5 + $0x48] sm:$0xff] }
  0x2f   :  { %v1533_v43 = vsub.f32 %v64_v19, %v146_v30  ;;  %v1933_v44 = vand.u32 4294901760, %v1521_v32  ;;  %v1536_v45 = vpack.c.bf16 %v98_v34, %v95_v33  ;;  %v1538_v46 = vsub.f32 %v47_v23, %v95_v33 }
  0x30   :  { %1181 = vmatpush3.bf16.msra.mxu0 %v1514_v27  ;;  %v310_v47 = vsub.f32 %v1519_v31, %v1935_v41  ;;  %v198_v48 = vsub.f32 %v1501_v15, %v1931_v35  ;;  %v205_v49 = vsub.f32 %v1505_v21, %v1930_v36  ;;  %v149_v50 = vand.u32 4294901760, %v65_v37  ;;  %v42_v41 = vld [vmem:[#allocation2 + $0x8] sm:$0xff] }
  0x31   :  { %1183 = vmatprep.subr.bf16.mxu0 %v1528_v39  ;;  %v317_v51 = vsub.f32 %v1521_v32, %v1933_v44  ;;  %v152_v52 = vand.u32 4294901760, %v66_v42  ;;  %v1928_v53 = vand.u32 4294901760, %v1510_v25  ;;  %v1926_v54 = vand.u32 4294901760, %v1512_v26 }
  0x32   :  { %v311_v57 = vand.u32 4294901760, %v310_v47  ;;  %v1556_v58 = vsub.f32 %v48_v24, %v98_v34  ;;  %v199_v59 = vand.u32 4294901760, %v198_v48  ;;  %v206_v60 = vand.u32 4294901760, %v205_v49 }
  0x33   :  { %v318_v61 = vand.u32 4294901760, %v317_v51  ;;  %v1558_v62 = vpack.c.bf16 %v152_v52, %v149_v50  ;;  %v1560_v63 = vsub.f32 %v65_v37, %v149_v50  ;;  %v324_v0 = vsub.f32 %v1510_v25, %v1928_v53 }
  0x34   :  { %1185 = vmatpush3.bf16.msra.mxu0 %v1536_v45  ;;  %v1208_v1 = vpack.c.bf16 %v206_v60, %v199_v59  ;;  %v331_v2 = vsub.f32 %v1512_v26, %v1926_v54  ;;  %v101_v3 = vand.u32 4294901760, %v49_v55  ;;  %v104_v4 = vand.u32 4294901760, %v50_v56  ;;  %v70_v59 = vld [vmem:[#allocation5 + $0xd8] sm:$0xff] }
  0x35   :  { %v1206_v7 = vpack.c.bf16 %v318_v61, %v311_v57  ;;  %1187 = vmatprep.subr.bf16.mxu0 %v1558_v62  ;;  %v325_v8 = vand.u32 4294901760, %v324_v0  ;;  %v1925_v9 = vand.u32 4294901760, %v1516_v28  ;;  %v1923_v10 = vand.u32 4294901760, %v1526_v38  ;;  %v69_v57 = vld [vmem:[#allocation5 + $0xd0] sm:$0xff]  ;;  %v74_v54 = vld [vmem:[#allocation5 + $0xf8] sm:$0xff] }
  0x36   :  { %v1572_v12 = vsub.f32 %v66_v42, %v152_v52  ;;  %v332_v13 = vand.u32 4294901760, %v331_v2  ;;  %v1574_v16 = vpack.c.bf16 %v104_v4, %v101_v3  ;;  %v1576_v17 = vsub.f32 %v49_v55, %v101_v3 }
  0x37   :  { %1207 = vmatprep.subr.bf16.mxu1 %v1206_v7  ;;  %v212_v18 = vsub.f32 %v1516_v28, %v1925_v9  ;;  %v219_v19 = vsub.f32 %v1526_v38, %v1923_v10  ;;  %v155_v23 = vand.u32 4294901760, %v67_v5  ;;  %v158_v24 = vand.u32 4294901760, %v68_v6  ;;  %v73_v9 = vld [vmem:[#allocation5 + $0xf0] sm:$0xff] }
  0x38   :  { %1209 = vmatpush3.bf16.msra.mxu1 %v1208_v1  ;;  %v1210_v30 = vpack.c.bf16 %v332_v13, %v325_v8  ;;  %1189 = vmatpush3.bf16.msra.mxu0 %v1574_v16  ;;  %v1921_v33 = vand.u32 4294901760, %v1530_v40  ;;  %v1920_v34 = vand.u32 4294901760, %v1533_v43  ;;  %v107_v37 = vand.u32 4294901760, %v51_v11  ;;  %v53_v1 = vld [vmem:[#allocation5 + $0x50] sm:$0xff] }
  0x39   :  { %v1587_v42 = vsub.f32 %v50_v56, %v104_v4  ;;  %v213_v47 = vand.u32 4294901760, %v212_v18  ;;  %v220_v48 = vand.u32 4294901760, %v219_v19  ;;  %v1589_v49 = vpack.c.bf16 %v158_v24, %v155_v23  ;;  %v54_v18 = vld [vmem:[#allocation5 + $0x58] sm:$0xff] }
  0x3a   :  { %1211 = vmatprep.subr.bf16.mxu1 %v1210_v30  ;;  %v1591_v50 = vsub.f32 %v67_v5, %v155_v23  ;;  %v338_v51 = vsub.f32 %v1530_v40, %v1921_v33  ;;  %v345_v52 = vsub.f32 %v1533_v43, %v1920_v34  ;;  %v110_v55 = vand.u32 4294901760, %v52_v29 }
  0x3b   :  { %v1212_v56 = vpack.c.bf16 %v220_v48, %v213_v47  ;;  %1191 = vmatprep.subr.bf16.mxu0 %v1589_v49  ;;  %v1600_v60 = vsub.f32 %v68_v6, %v158_v24  ;;  %v1918_v61 = vand.u32 4294901760, %v1538_v46  ;;  %v1916_v0 = vand.u32 4294901760, %v1556_v58 }
  0x3c   :  { %v339_v2 = vand.u32 4294901760, %v338_v51  ;;  %v346_v3 = vand.u32 4294901760, %v345_v52  ;;  %v1604_v4 = vpack.c.bf16 %v110_v55, %v107_v37  ;;  %v1606_v5 = vsub.f32 %v51_v11, %v107_v37 }
  0x3d   :  { %1213 = vmatpush3.bf16.msra.mxu1 %v1212_v56  ;;  %v226_v7 = vsub.f32 %v1538_v46, %v1918_v61  ;;  %v233_v6 = vsub.f32 %v1556_v58, %v1916_v0  ;;  %v161_v8 = vand.u32 4294901760, %v69_v57  ;;  %v164_v13 = vand.u32 4294901760, %v70_v59  ;;  %v72_v0 = vld [vmem:[#allocation5 + $0xe8] sm:$0xff] }
  0x3e   :  { %v1214_v19 = vpack.c.bf16 %v346_v3, %v339_v2  ;;  %1193 = vmatpush3.bf16.msra.mxu0 %v1604_v4  ;;  %v1917_v23 = vand.u32 4294901760, %v1560_v63  ;;  %v1919_v11 = vand.u32 4294901760, %v1572_v12  ;;  %v113_v24 = vand.u32 4294901760, %v53_v1  ;;  %v71_v3 = vld [vmem:[#allocation5 + $0xe0] sm:$0xff] }
  0x3f   :  { %v1617_v30 = vsub.f32 %v52_v29, %v110_v55  ;;  %v227_v37 = vand.u32 4294901760, %v226_v7  ;;  %v234_v47 = vand.u32 4294901760, %v233_v6  ;;  %v1619_v48 = vpack.c.bf16 %v164_v13, %v161_v8  ;;  %v55_v6 = vld [vmem:[#allocation5 + $0x60] sm:$0xff] }
  0x40   :  { %1215 = vmatprep.subr.bf16.mxu1 %v1214_v19  ;;  %v1621_v51 = vsub.f32 %v69_v57, %v161_v8  ;;  %v352_v52 = vsub.f32 %v1560_v63, %v1917_v23  ;;  %v359_v56 = vsub.f32 %v1572_v12, %v1919_v11  ;;  %v116_v2 = vand.u32 4294901760, %v54_v18  ;;  %v56_v11 = vld [vmem:[#allocation5 + $0x68] sm:$0xff] }
  0x41   :  { %v1216_v29 = vpack.c.bf16 %v234_v47, %v227_v37  ;;  %1195 = vmatprep.subr.bf16.mxu0 %v1619_v48  ;;  %v1630_v55 = vsub.f32 %v70_v59, %v164_v13  ;;  %v1922_v7 = vand.u32 4294901760, %v1576_v17  ;;  %v1924_v57 = vand.u32 4294901760, %v1587_v42 }
  0x42   :  { %v353_v8 = vand.u32 4294901760, %v352_v52  ;;  %v360_v19 = vand.u32 4294901760, %v359_v56  ;;  %v1634_v23 = vpack.c.bf16 %v116_v2, %v113_v24  ;;  %v1636_v61 = vsub.f32 %v53_v1, %v113_v24 }
  0x43   :  { %1217 = vmatpush3.bf16.msra.mxu1 %v1216_v29  ;;  %v240_v37 = vsub.f32 %v1576_v17, %v1922_v7  ;;  %v247_v59 = vsub.f32 %v1587_v42, %v1924_v57  ;;  %v167_v13 = vand.u32 4294901760, %v71_v3  ;;  %v170_v47 = vand.u32 4294901760, %v72_v0 }
  0x44   :  { %1961 = vst [vmem:[#allocation11_spill] sm:$0xff] %v1634_v23  ;;  %v1218_v34 = vpack.c.bf16 %v360_v19, %v353_v8  ;;  %1197 = vmatpush3.bf16.msra.mxu0 %v1634_v23  ;;  %v1927_v52 = vand.u32 4294901760, %v1591_v50  ;;  %v1929_v1 = vand.u32 4294901760, %v1600_v60  ;;  %v119_v24 = vand.u32 4294901760, %v55_v6 }
  0x45   :  { %v1647_v56 = vsub.f32 %v54_v18, %v116_v2  ;;  %v241_v29 = vand.u32 4294901760, %v240_v37  ;;  %v248_v33 = vand.u32 4294901760, %v247_v59  ;;  %v1649_v7 = vpack.c.bf16 %v170_v47, %v167_v13  ;;  %v57_v37 = vld [vmem:[#allocation5 + $0x70] sm:$0xff] }
  0x46   :  { %1219 = vmatprep.subr.bf16.mxu1 %v1218_v34  ;;  %v1651_v10 = vsub.f32 %v71_v3, %v167_v13  ;;  %v366_v8 = vsub.f32 %v1591_v50, %v1927_v52  ;;  %v373_v19 = vsub.f32 %v1600_v60, %v1929_v1  ;;  %v122_v57 = vand.u32 4294901760, %v56_v11  ;;  %v58_v1 = vld [vmem:[#allocation5 + $0x78] sm:$0xff] }
  0x47   :  { %1962 = vst [vmem:[#allocation12_spill] sm:$0xff] %v1649_v7  ;;  %v1220_v18 = vpack.c.bf16 %v248_v33, %v241_v29  ;;  %1199 = vmatprep.subr.bf16.mxu0 %v1649_v7  ;;  %v1660_v2 = vsub.f32 %v72_v0, %v170_v47  ;;  %v1932_v34 = vand.u32 4294901760, %v1606_v5  ;;  %v1934_v3 = vand.u32 4294901760, %v1617_v30 }
  0x48   :  { %v367_v59 = vand.u32 4294901760, %v366_v8  ;;  %v374_v13 = vand.u32 4294901760, %v373_v19  ;;  %v1664_v52 = vpack.c.bf16 %v122_v57, %v119_v24  ;;  %v1666_v53 = vsub.f32 %v55_v6, %v119_v24 }
  0x49   :  { %1221 = vmatpush3.bf16.msra.mxu1 %v1220_v18  ;;  %v254_v33 = vsub.f32 %v1606_v5, %v1932_v34  ;;  %v261_v0 = vsub.f32 %v1617_v30, %v1934_v3  ;;  %v173_v47 = vand.u32 4294901760, %v73_v9  ;;  %v176_v29 = vand.u32 4294901760, %v74_v54 }
  0x4a   :  { %1963 = vst [vmem:[#allocation13_spill] sm:$0xff] %v1664_v52  ;;  %v1222_v36 = vpack.c.bf16 %v374_v13, %v367_v59  ;;  %1201 = vmatpush3.bf16.msra.mxu0 %v1664_v52  ;;  %v1938_v8 = vand.u32 4294901760, %v1621_v51  ;;  %v1939_v6 = vand.u32 4294901760, %v1630_v55  ;;  %v125_v24 = vand.u32 4294901760, %v57_v37 }
  0x4b   :  { %v1677_v19 = vsub.f32 %v56_v11, %v122_v57  ;;  %v255_v18 = vand.u32 4294901760, %v254_v33  ;;  %v262_v35 = vand.u32 4294901760, %v261_v0  ;;  %v1679_v34 = vpack.c.bf16 %v176_v29, %v173_v47 }
  0x4c   :  { %1223 = vmatprep.subr.bf16.mxu1 %v1222_v36  ;;  %v1681_v44 = vsub.f32 %v73_v9, %v173_v47  ;;  %v380_v59 = vsub.f32 %v1621_v51, %v1938_v8  ;;  %v387_v13 = vsub.f32 %v1630_v55, %v1939_v6  ;;  %v128_v3 = vand.u32 4294901760, %v58_v1  ;;  %v41_v9 = vld [vmem:[#allocation2] sm:$0xff] }
  0x4d   :  { %1964 = vst [vmem:[#allocation14_spill] sm:$0xff] %v1679_v34  ;;  %v1224_v52 = vpack.c.bf16 %v262_v35, %v255_v18  ;;  %1203 = vmatprep.subr.bf16.mxu0 %v1679_v34  ;;  %v1690_v11 = vsub.f32 %v74_v54, %v176_v29  ;;  %v1940_v57 = vand.u32 4294901760, %v1636_v61  ;;  %v1941_v36 = vand.u32 4294901760, %v1647_v56 }
  0x4e   :  { %v381_v33 = vand.u32 4294901760, %v380_v59  ;;  %v388_v0 = vand.u32 4294901760, %v387_v13  ;;  %v1694_v47 = vpack.c.bf16 %v128_v3, %v125_v24  ;;  %v1696_v8 = vsub.f32 %v57_v37, %v125_v24 }
  0x4f   :  { %1225 = vmatpush3.bf16.msra.mxu1 %v1224_v52  ;;  %v268_v35 = vsub.f32 %v1636_v61, %v1940_v57  ;;  %v275_v54 = vsub.f32 %v1647_v56, %v1941_v36  ;;  %v1704_v29 = vand.u32 4294901760, %v42_v41  ;;  %v1944_v18 = vand.u32 4294901760, %v1651_v10 }
  0x50   :  { %1965 = vst [vmem:[#allocation15_spill] sm:$0xff] %v1694_v47  ;;  %v1226_v6 = vpack.c.bf16 %v388_v0, %v381_v33  ;;  %1205 = vmatpush3.bf16.msra.mxu0 %v1694_v47  ;;  %v1950_v59 = vand.u32 4294901760, %v1660_v2  ;;  %v1238_v52 = vpack.c.bf16 %v1521_v32, %v1519_v31  ;;  %v1711_v37 = vand.u32 4294901760, %v41_v9 }
  0x51   :  { %1966 = vst [vmem:[#allocation16_spill] sm:$0xff] %v1704_v29  ;;  %v269_v24 = vand.u32 4294901760, %v268_v35  ;;  %v276_v13 = vand.u32 4294901760, %v275_v54  ;;  %v1714_v57 = vsub.f32 %v42_v41, %v1704_v29  ;;  %v394_v36 = vsub.f32 %v1651_v10, %v1944_v18  ;;  %419 = vmatprep.mubr.f32.mxu1 %v1704_v29 }
  0x52   :  { %1227 = vmatprep.subr.bf16.mxu1 %v1226_v6  ;;  %v401_v33 = vsub.f32 %v1660_v2, %v1950_v59  ;;  %1239 = vmatprep.subr.bf16.mxu0 %v1238_v52  ;;  %v1724_v0 = vsub.f32 %v41_v9, %v1711_v37  ;;  %v1949_v35 = vand.u32 4294901760, %v1666_v53  ;;  %v1951_v41 = vand.u32 4294901760, %v1677_v19 }
  0x53   :  { %v1728_v54 = vsub.f32 %v58_v1, %v128_v3  ;;  %v1228_v47 = vpack.c.bf16 %v276_v13, %v269_v24  ;;  %v1952_v18 = vand.u32 4294901760, %v1714_v57  ;;  %v395_v34 = vand.u32 4294901760, %v394_v36 }
  0x54   :  { %v402_v29 = vand.u32 4294901760, %v401_v33  ;;  %v186_v6 = vand.u32 4294901760, %v1724_v0  ;;  %v282_v52 = vsub.f32 %v1666_v53, %v1949_v35  ;;  %v289_v9 = vsub.f32 %v1677_v19, %v1951_v41 }
  0x55   :  { %1229 = vmatpush3.bf16.msra.mxu1 %v1228_v47  ;;  %v181_v1 = vsub.f32 %v1714_v57, %v1952_v18  ;;  %v1240_v3 = vpack.c.bf16 %v1505_v21, %v1501_v15  ;;  %v1957_v36 = vand.u32 4294901760, %v1681_v44  ;;  %v1960_v24 = vand.u32 4294901760, %v1690_v11 }
  0x56   :  { %v1230_v13 = vpack.c.bf16 %v402_v29, %v395_v34  ;;  %v187_v33 = vsub.f32 %v1724_v0, %v186_v6  ;;  %v283_v35 = vand.u32 4294901760, %v282_v52  ;;  %v290_v59 = vand.u32 4294901760, %v289_v9 }
  0x57   :  { %v182_v41 = vand.u32 4294901760, %v181_v1  ;;  %v408_v47 = vsub.f32 %v1681_v44, %v1957_v36  ;;  %v415_v18 = vsub.f32 %v1690_v11, %v1960_v24  ;;  %v1959_v7 = vand.u32 4294901760, %v1696_v8 }
  0x58   :  { %1231 = vmatprep.subr.bf16.mxu1 %v1230_v13  ;;  %v188_v23 = vand.u32 4294901760, %v187_v33  ;;  %v1232_v34 = vpack.c.bf16 %v290_v59, %v283_v35  ;;  %v1242_v29 = vpack.c.bf16 %v1512_v26, %v1510_v25  ;;  %v1958_v52 = vand.u32 4294901760, %v1728_v54 }
  0x59   :  { %183 = vmatprep.mubr.f32.mxu0 %v182_v41  ;;  %v409_v9 = vand.u32 4294901760, %v408_v47  ;;  %v416_v1 = vand.u32 4294901760, %v415_v18  ;;  %v296_v36 = vsub.f32 %v1696_v8, %v1959_v7  ;;  %v1244_v33 = vpack.c.bf16 %v1526_v38, %v1516_v28 }
  0x5a   :  { %189 = vmatmul.mubr.f32.vlgmr.msra.gmra.mrb[0].mxu0 %v188_v23  ;;  %1233 = vmatpush3.bf16.msra.mxu1 %v1232_v34  ;;  %v303_v13 = vsub.f32 %v1728_v54, %v1958_v52  ;;  %v1246_v41 = vpack.c.bf16 %v1533_v43, %v1530_v40  ;;  %v1248_v23 = vpack.c.bf16 %v1556_v58, %v1538_v46  ;;  %v1968_v34 = vand.u32 4294901760, %v1521_v32 }
  0x5b   :  { %1241 = vmatpush3.bf16.msra.mxu0 %v1240_v3  ;;  %v1234_v59 = vpack.c.bf16 %v416_v1, %v409_v9  ;;  %v297_v35 = vand.u32 4294901760, %v296_v36  ;;  %556 = vmatprep.mubr.f32.mxu0 %v1714_v57  ;;  %v1250_v47 = vpack.c.bf16 %v1572_v12, %v1560_v63  ;;  %v1967_v36 = vand.u32 4294901760, %v1519_v31 }
  0x5c   :  { %1243 = vmatprep.subr.bf16.mxu0 %v1242_v29  ;;  %v304_v18 = vand.u32 4294901760, %v303_v13  ;;  %v1969_v1 = vand.u32 4294901760, %v1501_v15  ;;  %v1970_v29 = vand.u32 4294901760, %v1505_v21  ;;  %v1971_v52 = vand.u32 4294901760, %v1510_v25 }
  0x5d   :  { %1235 = vmatprep.subr.bf16.mxu1 %v1234_v59  ;;  %v1302_v9 = vpack.c.bf16 %v1968_v34, %v1967_v36  ;;  %v1972_v59 = vand.u32 4294901760, %v1512_v26  ;;  %v1973_v24 = vand.u32 4294901760, %v1516_v28  ;;  %v1975_v31 = vand.u32 4294901760, %v1530_v40 }
  0x5e   :  { %v1236_v3 = vpack.c.bf16 %v304_v18, %v297_v35  ;;  %v1304_v13 = vpack.c.bf16 %v1970_v29, %v1969_v1  ;;  %v1974_v35 = vand.u32 4294901760, %v1526_v38  ;;  %v1976_v32 = vand.u32 4294901760, %v1533_v43  ;;  %v1991_v29 = vld [vmem:[#allocation13_spill] sm:$0xff] }
  0x5f   :  { %v1306_v7 = vpack.c.bf16 %v1972_v59, %v1971_v52  ;;  %1245 = vmatpush3.bf16.msra.mxu0 %v1244_v33  ;;  %v1977_v15 = vand.u32 4294901760, %v1538_v46  ;;  %v1978_v21 = vand.u32 4294901760, %v1556_v58  ;;  %v1979_v25 = vand.u32 4294901760, %v1560_v63  ;;  %v1992_v59 = vld [vmem:[#allocation14_spill] sm:$0xff] }
  0x60   :  { %v1308_v18 = vpack.c.bf16 %v1974_v35, %v1973_v24  ;;  %v1310_v36 = vpack.c.bf16 %v1976_v32, %v1975_v31  ;;  %v1980_v26 = vand.u32 4294901760, %v1572_v12  ;;  %1237 = vmatpush3.bf16.msra.mxu1 %v1236_v3  ;;  %1247 = vmatprep.subr.bf16.mxu0 %v1246_v41  ;;  %v1981_v28 = vand.u32 4294901760, %v1576_v17  ;;  %v1993_v35 = vld [vmem:[#allocation15_spill] sm:$0xff] }
  0x61   :  { %v1312_v34 = vpack.c.bf16 %v1978_v21, %v1977_v15  ;;  %v1982_v38 = vand.u32 4294901760, %v1587_v42  ;;  %v1983_v43 = vand.u32 4294901760, %v1591_v50  ;;  %v1984_v24 = vand.u32 4294901760, %v1600_v60  ;;  %1271 = vmatprep.subr.bf16.mxu1 %v1499_v14 }
  0x62   :  { %v1314_v52 = vpack.c.bf16 %v1980_v26, %v1979_v25  ;;  %v1985_v58 = vand.u32 4294901760, %v1606_v5  ;;  %v1986_v33 = vand.u32 4294901760, %v1617_v30  ;;  %v1252_v12 = vpack.c.bf16 %v1587_v42, %v1576_v17 }
  0x63   :  { %v1316_v40 = vpack.c.bf16 %v1982_v38, %v1981_v28  ;;  %v1318_v46 = vpack.c.bf16 %v1984_v24, %v1983_v43  ;;  %421 = vmatmul.mubr.f32.vlgmr.msra.gmra.mrb[0].mxu1 %v1711_v37  ;;  %1249 = vmatpush3.bf16.msra.mxu0 %v1248_v23  ;;  %v1254_v41 = vpack.c.bf16 %v1600_v60, %v1591_v50  ;;  %v1987_v3 = vand.u32 4294901760, %v1714_v57  ;;  %v1988_v57 = vld [vmem:[#allocation11_spill] sm:$0xff]  ;;  %v1989_v23 = vld [vmem:[#allocation12_spill] sm:$0xff] }
  0x64   :  { %v1320_v63 = vpack.c.bf16 %v1986_v33, %v1985_v58  ;;  %1273 = vmatpush3.bf16.msra.mxu1 %v1503_v20  ;;  %1251 = vmatprep.subr.bf16.mxu0 %v1250_v47  ;;  %v1256_v1 = vpack.c.bf16 %v1617_v30, %v1606_v5  ;;  %v1258_v17 = vpack.c.bf16 %v1630_v55, %v1621_v51  ;;  %v1990_v47 = vld [vmem:[#allocation16_spill] sm:$0xff] }
  0x65   :  { %1275 = vmatprep.subr.bf16.mxu1 %v1507_v22  ;;  %663 = vmatprep.mubr.f32.mxu1 %v1987_v3  ;;  %v1260_v42 = vpack.c.bf16 %v1647_v56, %v1636_v61  ;;  %v1262_v50 = vpack.c.bf16 %v1660_v2, %v1651_v10  ;;  %v1264_v60 = vpack.c.bf16 %v1677_v19, %v1666_v53 }
  0x66   :  { %v1266_v5 = vpack.c.bf16 %v1690_v11, %v1681_v44  ;;  %v1268_v30 = vpack.c.bf16 %v1728_v54, %v1696_v8 }
  0x67   :  { %1253 = vmatpush3.bf16.msra.mxu0 %v1252_v12 }
  0x68   :  { %1277 = vmatpush3.bf16.msra.mxu1 %v1514_v27  ;;  %1255 = vmatprep.subr.bf16.mxu0 %v1254_v41 }
  0x69   :  { %1279 = vmatprep.subr.bf16.mxu1 %v1528_v39 }
  0x6b   :  { %1257 = vmatpush3.bf16.msra.mxu0 %v1256_v1 }
  0x6c   :  { %1281 = vmatpush3.bf16.msra.mxu1 %v1536_v45  ;;  %1259 = vmatprep.subr.bf16.mxu0 %v1258_v17 }
  0x6d   :  { %1283 = vmatprep.subr.bf16.mxu1 %v1558_v62 }
  0x6f   :  { %1261 = vmatpush3.bf16.msra.mxu0 %v1260_v42 }
  0x70   :  { %1285 = vmatpush3.bf16.msra.mxu1 %v1574_v16  ;;  %1263 = vmatprep.subr.bf16.mxu0 %v1262_v50 }
  0x71   :  { %1287 = vmatprep.subr.bf16.mxu1 %v1589_v49 }
  0x73   :  { %1265 = vmatpush3.bf16.msra.mxu0 %v1264_v60 }
  0x74   :  { %1289 = vmatpush3.bf16.msra.mxu1 %v1604_v4  ;;  %1267 = vmatprep.subr.bf16.mxu0 %v1266_v5 }
  0x75   :  { %1291 = vmatprep.subr.bf16.mxu1 %v1619_v48 }
  0x77   :  { %1269 = vmatpush3.bf16.msra.mxu0 %v1268_v30 }
  0x78   :  { %1293 = vmatpush3.bf16.msra.mxu1 %v1988_v57  ;;  %1303 = vmatprep.subr.bf16.mxu0 %v1302_v9  ;;  %v1995_v9 = vand.u32 4294901760, %v1630_v55 }
  0x79   :  { %1295 = vmatprep.subr.bf16.mxu1 %v1989_v23 }
  0x7a   :  { %559 = vmatmul.mubr.f32.vlgmr.msra.gmra.mrb[2].mxu0 %v1724_v0  ;;  %v1996_v0 = vand.u32 4294901760, %v1636_v61  ;;  %v2002_v61 = vand.u32 4294901760, %v1681_v44 }
  0x7b   :  { %1305 = vmatpush3.bf16.msra.mxu0 %v1304_v13  ;;  %833 = vmatprep.mubr.f32.mxu0 %v1990_v47 }
  0x7c   :  { %1297 = vmatpush3.bf16.msra.mxu1 %v1991_v29  ;;  %1307 = vmatprep.subr.bf16.mxu0 %v1306_v7  ;;  %v1994_v7 = vand.u32 4294901760, %v1621_v51  ;;  %v2000_v51 = vand.u32 4294901760, %v1666_v53 }
  0x7d   :  { %1299 = vmatprep.subr.bf16.mxu1 %v1992_v59 }
  0x7f   :  { %1309 = vmatpush3.bf16.msra.mxu0 %v1308_v18 }
  0x80   :  { %1301 = vmatpush3.bf16.msra.mxu1 %v1993_v35  ;;  %1311 = vmatprep.subr.bf16.mxu0 %v1310_v36 }
  0x81   :  { %1335 = vmatprep.subr.bf16.mxu1 %v1499_v14  ;;  %v1322_v14 = vpack.c.bf16 %v1995_v9, %v1994_v7 }
  0x83   :  { %667 = vmatmul.mubr.f32.vlgmr.msra.gmra.mrb[2].mxu1 %v186_v6  ;;  %1313 = vmatpush3.bf16.msra.mxu0 %v1312_v34 }
  0x84   :  { %1337 = vmatpush3.bf16.msra.mxu1 %v1503_v20  ;;  %1315 = vmatprep.subr.bf16.mxu0 %v1314_v52  ;;  %v1997_v20 = vand.u32 4294901760, %v1647_v56 }
  0x85   :  { %1339 = vmatprep.subr.bf16.mxu1 %v1507_v22  ;;  %937 = vmatprep.mubr.f32.mxu1 %v1990_v47  ;;  %v1998_v22 = vand.u32 4294901760, %v1651_v10  ;;  %v2004_v10 = vand.u32 4294901760, %v1696_v8 }
  0x86   :  { %v1324_v6 = vpack.c.bf16 %v1997_v20, %v1996_v0 }
  0x87   :  { %1317 = vmatpush3.bf16.msra.mxu0 %v1316_v40 }
  0x88   :  { %1341 = vmatpush3.bf16.msra.mxu1 %v1514_v27  ;;  %1319 = vmatprep.subr.bf16.mxu0 %v1318_v46  ;;  %v1999_v27 = vand.u32 4294901760, %v1660_v2 }
  0x89   :  { %1343 = vmatprep.subr.bf16.mxu1 %v1528_v39  ;;  %v2001_v39 = vand.u32 4294901760, %v1677_v19 }
  0x8a   :  { %v1326_v13 = vpack.c.bf16 %v1999_v27, %v1998_v22 }
  0x8b   :  { %1321 = vmatpush3.bf16.msra.mxu0 %v1320_v63  ;;  %v1328_v55 = vpack.c.bf16 %v2001_v39, %v2000_v51 }
  0x8c   :  { %1345 = vmatpush3.bf16.msra.mxu1 %v1536_v45  ;;  %1323 = vmatprep.subr.bf16.mxu0 %v1322_v14  ;;  %v2003_v45 = vand.u32 4294901760, %v1690_v11 }
  0x8d   :  { %1347 = vmatprep.subr.bf16.mxu1 %v1558_v62  ;;  %v2005_v62 = vand.u32 4294901760, %v1728_v54 }
  0x8e   :  { %v1330_v56 = vpack.c.bf16 %v2003_v45, %v2002_v61 }
  0x8f   :  { %1325 = vmatpush3.bf16.msra.mxu0 %v1324_v6  ;;  %v1332_v2 = vpack.c.bf16 %v2005_v62, %v2004_v10 }
  0x90   :  { %1349 = vmatpush3.bf16.msra.mxu1 %v1574_v16  ;;  %1327 = vmatprep.subr.bf16.mxu0 %v1326_v13 }
  0x91   :  { %1351 = vmatprep.subr.bf16.mxu1 %v1589_v49  ;;  %v963_v49 = vld [vmem:[%s1914_s2] ss:$0 sm:$0xff]  ;;  %s1447_s2 = smov [#allocation7]  }
  0x92   :  { %s953_s11 = sshll.u32 %s1447_s2, 4  ;;  %s954_s11 = int_to_ptr.vmem [resolvable:$true] %s953_s11 }
  0x93   :  { %1329 = vmatpush3.bf16.msra.mxu0 %v1328_v55  ;;  %s1415_s12 = scalar_lea.vmem %s954_s11, 128  ;;  %p1420_p3 = scmp.lt.s32.totalorder %s954_s11, %s954_s11 }
  0x94   :  { %1353 = vmatpush3.bf16.msra.mxu1 %v1604_v4  ;;  %1331 = vmatprep.subr.bf16.mxu0 %v1330_v56  ;;  %p1416_p2 = scmp.ne.s32.totalorder %s954_s11, %s1415_s12  ;;  %p1421_p4 = scmp.lt.s32.totalorder %s1415_s12, %s1415_s12 }
  0x95   :  { %1355 = vmatprep.subr.bf16.mxu1 %v1619_v48 }
  0x96   :  { %p1422_p5 = por %p1421_p4, %p1420_p3 }
  0x97   :  { %1333 = vmatpush3.bf16.msra.mxu0 %v1332_v2 }
  0x98   :  { %1357 = vmatpush3.bf16.msra.mxu1 %v1988_v57  ;;  %p1423_p6 = pnand %p1422_p5, %p1416_p2 }
  0x99   :  { %1359 = vmatprep.subr.bf16.mxu1 %v1989_v23 }
  0x9a   :  { %835 = vmatmul.mubr.f32.vlgmr.msra.gmra.mrb[4].mxu0 %v1711_v37 }
  0x9c   :  { %1361 = vmatpush3.bf16.msra.mxu1 %v1991_v29 }
  0x9d   :  { %1363 = vmatprep.subr.bf16.mxu1 %v1992_v59 }
  0xa0   :  { %1365 = vmatpush3.bf16.msra.mxu1 %v1993_v35 }
  0xa3   :  { %939 = vmatmul.mubr.f32.vlgmr.msra.gmra.mrb[4].mxu1 %v1711_v37 }
 0x12d   :  { %v996_v44 = vpop.f32.mrb[0].mxu0 }
 0x12e   :  { %v997_v53 = vpop.f32.mrb[1].mxu0 }
 0x12f   :  { %v998_v16 = vadd.f32 %v997_v53, %v996_v44 }
 0x131   :  { %v191_v4 = vadd.f32 %v998_v16, %v963_v49 }
 0x136   :  { %v1031_v48 = vpop.f32.mrb[0].mxu1 }
 0x137   :  { %v1032_v8 = vpop.f32.mrb[1].mxu1 }
 0x138   :  { %v1033_v19 = vadd.f32 %v1032_v8, %v1031_v48 }
 0x13a   :  { %v423_v11 = vadd.f32 %v1033_v19, %v191_v4 }
 0x14d   :  { %v1066_v54 = vpop.f32.mrb[2].mxu0 }
 0x14e   :  { %v1067_v18 = vpop.f32.mrb[3].mxu0 }
 0x14f   :  { %v1068_v31 = vadd.f32 %v1067_v18, %v1066_v54 }
 0x151   :  { %v561_v32 = vadd.f32 %v1068_v31, %v423_v11 }
 0x156   :  { %v1101_v36 = vpop.f32.mrb[2].mxu1 }
 0x157   :  { %v1102_v15 = vpop.f32.mrb[3].mxu1 }
 0x158   :  { %v1103_v21 = vadd.f32 %v1102_v15, %v1101_v36 }
 0x15a   :  { %v669_v37 = vadd.f32 %v1103_v21, %v561_v32 }
 0x16d   :  { %v1136_v34 = vpop.f32.mrb[4].mxu0 }
 0x16e   :  { %v1137_v25 = vpop.f32.mrb[5].mxu0 }
 0x16f   :  { %v1138_v26 = vadd.f32 %v1137_v25, %v1136_v34 }
 0x171   :  { %v837_v52 = vadd.f32 %v1138_v26, %v669_v37 }
 0x176   :  { %v1171_v28 = vpop.f32.mrb[4].mxu1 }
 0x177   :  { %v1172_v38 = vpop.f32.mrb[5].mxu1 }
 0x178   :  { %v1173_v40 = vadd.f32 %v1172_v38, %v1171_v28 }
 0x17a   :  { %v941_v43 = vadd.f32 %v1173_v40, %v837_v52 }
 0x17c   :  { %v944_v24 = vmax.f32 %v941_v43, -1.0 }
 0x17e   :  { %v945_v46 = vmin.f32 %v944_v24, 0.0 }
 0x180   :  { %946 = vst [vmem:[#allocation7] sm:$0xff] %v945_v46 }
 0x181   :  { %1426 = shalt.err (!%p1423_p6)
}
 0x182   :  { %s1427_s15 = scalar_lea.hbm %s1915_s3, 128 }
 0x183   :  { %p1428_p7 = scmp.ne.s32.totalorder %s1915_s3, %s1427_s15  ;;  %p1431_p8 = scmp.lt.u32.totalorder %s1427_s15, %s1915_s3 }
 0x185   :  { %p1433_p9 = pnand %p1431_p8, %p1428_p7 }
 0x187   :  { %1436 = shalt.err (!%p1433_p9)
}
 0x188   :  { %956 = dma.vmem_to_hbm [thread:$0]  %s954_s11, 128, %s1915_s3, [#allocation4]  }
 0x189   :  { %1441 = dma.done.wait [#allocation4], 128  }
 0x18a   :  { %1442 = vsyncadd [#allocation4], 4294967168 }
 0x18b   :  { %960 = vsyncpa [#allocation3], 1 }
 0x18c   :  { %961 = vsyncpa [#allocation6], 1 }
 0x18d   :  { %962 = vsyncpa [#allocation4], 1 }

</bundles_post_ra>
